<compile_context>
chip_gen: v7x
topology: tpu7x:2x2x1
jax: 0.10.0
libtpu: 0.0.40
codegen_flags: <defaults>
</compile_context>

<pallas_src>
import math

import jax
import jax.numpy as jnp
import numpy as np
from jax.experimental import pallas as pl
from jax.experimental.pallas import tpu as pltpu


_SMALL_GEMM_MACS = 1 << 20   # below this, XLA's fused dot beats the custom call
_TM_CAP = 512
_TN_CAP = 512
_TK_CAP = 1024


def _round_up(a, b):
    return (a + b - 1) // b * b


def _k_tiling(K):
    """Pick (tk, Kp): Kp = K rounded to 128, tk = largest 128-multiple <= cap
    that divides Kp (no extra K padding beyond the 128 round-up)."""
    kp = _round_up(K, 128)
    units = kp // 128
    cap_units = _TK_CAP // 128
    best = 1
    for d in range(1, min(units, cap_units) + 1):
        if units % d == 0:
            best = d
    return best * 128, kp


def _vmem_limit_bytes():
    cap = None
    try:
        cap = getattr(pltpu.get_tpu_info(), "vmem_capacity_bytes", None)
    except Exception:
        cap = None
    if not cap:
        cap = 64 * 1024 * 1024            # conservative (v7x-sized) fallback
    # 128-MiB chips (v5e/v6e) -> 64 MiB; 64-MiB chips (v7x) -> 32 MiB.
    return int(min(64 * 1024 * 1024, max(32 * 1024 * 1024, cap // 2)))


def prepare_weight(weight, *, transpose=False, dtype=jnp.bfloat16):
    """One-time weight formatting (do this at model init, not per forward).

    weight:    stored parameter; (dimin, dimout) for the newLinear branch,
               (dimout, dimin) for the nn.Linear branch (pass transpose=True).
    Returns W_eff of shape (Kp, dimout), K zero-padded to a 128 multiple and
    cast to `dtype` (bf16 by default; MXU truncates to bf16 anyway).
    """
    # TODO(synk): geotorch.almost_orthogonal(weight, 0.1) is parameter
    # construction, not forward compute; the kernel consumes the materialized
    # effective weight directly.
    w = weight.T if transpose else weight
    K = w.shape[0]
    _, kp = _k_tiling(K)
    if kp != K:
        w = jnp.pad(w, ((0, kp - K), (0, 0)))
    return w.astype(dtype)


# ---------------------------------------------------------------------------
# Kernel: tiled matmul, f32 output accumulated in place (K is the last grid
# axis; the output tile stays VMEM-resident across it).
# ---------------------------------------------------------------------------
def _matmul_kernel(x_ref, w_ref, o_ref):
    @pl.when(pl.program_id(2) == 0)
    def _():
        o_ref[...] = jnp.zeros_like(o_ref)

    o_ref[...] += jnp.dot(x_ref[...], w_ref[...],
                          preferred_element_type=jnp.float32)


# ---------------------------------------------------------------------------
# Wrapper: y = x @ W_eff (no bias).  x: (..., dimin); w_prepared from
# prepare_weight() with shape (Kp, dimout).
# ---------------------------------------------------------------------------
def mlp_out_ort_almost_forward(x, w_prepared, *, force_pallas=False):
    *lead, K = x.shape
    tk, kp = _k_tiling(K)
    kp_w, N = w_prepared.shape
    assert kp_w == kp, (kp_w, kp)

    x2 = x.reshape(-1, K)
    M = x2.shape[0]

    # Small-GEMM bypass: at the real CIFAR head sizes a single fused dot wins.
    if (not force_pallas) and (M * K * N < _SMALL_GEMM_MACS):
        w = w_prepared[:K] if kp != K else w_prepared
        y = jnp.dot(x2.astype(w_prepared.dtype), w,
                    preferred_element_type=jnp.float32)
        return y.astype(jnp.float32).reshape(tuple(lead) + (N,))

    # Only K is zero-padded (reduction correctness); M/N use ragged edge tiles.
    x2 = x2.astype(w_prepared.dtype)
    if kp != K:
        x2 = jnp.pad(x2, ((0, 0), (0, kp - K)))

    itemsize = jnp.dtype(w_prepared.dtype).itemsize
    sub = 8 * (4 // itemsize)                 # 16 for bf16 packing, 8 for f32
    tm = min(_TM_CAP, _round_up(M, sub))
    tn = min(_TN_CAP, _round_up(N, 128))

    # Make sure the parallel axes expose >= 2 steps so both v7x TCs get work.
    if pl.cdiv(M, tm) * pl.cdiv(N, tn) == 1:
        if N > 128:
            tn = _round_up(pl.cdiv(N, 2), 128)
        elif M > sub:
            tm = _round_up(pl.cdiv(M, 2), sub)

    grid = (pl.cdiv(M, tm), pl.cdiv(N, tn), kp // tk)

    cost = pl.CostEstimate(
        flops=2 * M * N * K,
        transcendentals=0,
        bytes_accessed=M * kp * itemsize + kp * N * itemsize + M * N * 4)

    out = pl.pallas_call(
        _matmul_kernel,
        out_shape=jax.ShapeDtypeStruct((M, N), jnp.float32),
        grid_spec=pltpu.PrefetchScalarGridSpec(
            num_scalar_prefetch=0,
            grid=grid,
            in_specs=[
                pl.BlockSpec((tm, tk), lambda i, j, k: (i, k)),
                pl.BlockSpec((tk, tn), lambda i, j, k: (k, j)),
            ],
            out_specs=pl.BlockSpec((tm, tn), lambda i, j, k: (i, j)),
        ),
        compiler_params=pltpu.CompilerParams(
            dimension_semantics=("parallel", "parallel", "arbitrary"),
            vmem_limit_bytes=_vmem_limit_bytes()),
        cost_estimate=cost,
    )(x2, w_prepared)

    return out.reshape(tuple(lead) + (N,))


# ---------------------------------------------------------------------------
# Reference (same bf16-quantized inputs, full-precision accumulation).
# ---------------------------------------------------------------------------
def _reference(x, w_eff, dtype):
    xr = jnp.asarray(x).astype(dtype).astype(jnp.float32)
    wr = jnp.asarray(w_eff).astype(dtype).astype(jnp.float32)
    return np.asarray(jnp.dot(xr, wr, precision=jax.lax.Precision.HIGHEST))


# ---------------------------------------------------------------------------
if __name__ == "__main__":
    key = jax.random.PRNGKey(0)
    k1, k2, k3, k4 = jax.random.split(key, 4)

    # ---- Case 1: CIFAR-head-like size, newLinear branch (dimin >= dimout).
    batch, dimin, dimout = 8, 64, 32
    x_small = jax.random.normal(k1, (batch, dimin), jnp.float32)
    bound = 1.0 / math.sqrt(dimin)
    w_small_raw = jax.random.uniform(k2, (dimin, dimout), jnp.float32,
                                     -bound, bound)           # (in, out) layout
    w_small = prepare_weight(w_small_raw, transpose=False)
    ref_small = _reference(x_small, w_small_raw, w_small.dtype)

    y_bypass = jax.block_until_ready(
        mlp_out_ort_almost_forward(x_small, w_small))                 # jnp.dot path
    y_pallas = jax.block_until_ready(
        mlp_out_ort_almost_forward(x_small, w_small, force_pallas=True))  # kernel path
    np.testing.assert_allclose(np.asarray(y_bypass), ref_small, rtol=2e-2, atol=2e-2)
    np.testing.assert_allclose(np.asarray(y_pallas), ref_small, rtol=2e-2, atol=2e-2)
    assert y_pallas.shape == (batch, dimout) and y_pallas.dtype == jnp.float32

    # ---- Case 2: nn.Linear branch (dimin < stored rows), ragged M/N edge
    # tiles, multi-step K reduction and the 2-tile N split.
    lead, dimin2, dimout2 = (2, 48), 1152, 160
    x_big = jax.random.normal(k3, lead + (dimin2,), jnp.float32)
    w_big_raw = jax.random.uniform(k4, (dimout2, dimin2), jnp.float32,
                                   -0.05, 0.05)               # (out, in) layout
    w_big = prepare_weight(w_big_raw, transpose=True)
    ref_big = _reference(x_big, w_big_raw.T, w_big.dtype)

    y_big = jax.block_until_ready(mlp_out_ort_almost_forward(x_big, w_big))
    np.testing.assert_allclose(np.asarray(y_big), ref_big, rtol=2e-2, atol=2e-2)
    assert y_big.shape == lead + (dimout2,) and y_big.dtype == jnp.float32

    print("KERNEL_OK")
</pallas_src>

<mosaic_0001>
module attributes {stable_mosaic.version = 11 : i64} {
  func.func @_matmul_kernel(%arg0: i32, %arg1: i32, %arg2: i32, %arg3: memref<16x128xbf16, #tpu.memory_space<vmem>>, %arg4: memref<128x128xbf16, #tpu.memory_space<vmem>>, %arg5: memref<16x128xf32, #tpu.memory_space<vmem>>) attributes {dimension_semantics = [#tpu.dimension_semantics<parallel>, #tpu.dimension_semantics<parallel>, #tpu.dimension_semantics<arbitrary>], iteration_bounds = array<i64: 1, 1, 1>, scalar_prefetch = 0 : i64, scratch_operands = 0 : i64, tpu.core_type = #tpu.core_type<tc>, window_params = [{transform_indices = @transform_0, window_bounds = array<i64: 16, 128>}, {transform_indices = @transform_1, window_bounds = array<i64: 128, 128>}, {transform_indices = @transform_2, window_bounds = array<i64: 16, 128>}]} {
    %c0_i32 = arith.constant 0 : i32
    %0 = arith.cmpi eq, %arg2, %c0_i32 : i32
    %1 = arith.extui %0 : i1 to i32
    %c0_i32_0 = arith.constant 0 : i32
    %2 = arith.cmpi ne, %1, %c0_i32_0 : i32
    scf.if %2 {
      %cst_8 = arith.constant 0.000000e+00 : f32
      %9 = vector.broadcast %cst_8 : f32 to vector<16x128xf32>
      %c0_9 = arith.constant 0 : index
      %c0_10 = arith.constant 0 : index
      %10 = vector.load %arg5[%c0_9, %c0_10] : memref<16x128xf32, #tpu.memory_space<vmem>>, vector<16x128xf32>
      tpu.vector_store %arg5[%c0_9, %c0_10], %9 {strides = array<i32>} : memref<16x128xf32, #tpu.memory_space<vmem>>, vector<16x128xf32>,
    } else {
    }
    %c0 = arith.constant 0 : index
    %c0_1 = arith.constant 0 : index
    %3 = vector.load %arg5[%c0, %c0_1] : memref<16x128xf32, #tpu.memory_space<vmem>>, vector<16x128xf32>
    %c0_2 = arith.constant 0 : index
    %c0_3 = arith.constant 0 : index
    %4 = vector.load %arg3[%c0_2, %c0_3] : memref<16x128xbf16, #tpu.memory_space<vmem>>, vector<16x128xbf16>
    %c0_4 = arith.constant 0 : index
    %c0_5 = arith.constant 0 : index
    %5 = vector.load %arg4[%c0_4, %c0_5] : memref<128x128xbf16, #tpu.memory_space<vmem>>, vector<128x128xbf16>
    %cst = arith.constant dense<0.000000e+00> : vector<16x128xf32>
    %6 = tpu.matmul %4, %5, %cst {dimension_numbers = #tpu.dot_dimension_numbers<[1], [0], [0], [1], [0, 0, 1, 1], [], []>} : vector<16x128xbf16>, vector<128x128xbf16>, vector<16x128xf32> -> vector<16x128xf32>
    %7 = arith.addf %3, %6 : vector<16x128xf32>
    %c0_6 = arith.constant 0 : index
    %c0_7 = arith.constant 0 : index
    %8 = vector.load %arg5[%c0_6, %c0_7] : memref<16x128xf32, #tpu.memory_space<vmem>>, vector<16x128xf32>
    tpu.vector_store %arg5[%c0_6, %c0_7], %7 {strides = array<i32>} : memref<16x128xf32, #tpu.memory_space<vmem>>, vector<16x128xf32>,
    return
  }
  func.func @transform_0(%arg0: i32, %arg1: i32, %arg2: i32) -> (i32, i32) {
    %c0_i32 = arith.constant 0 : i32
    return %arg0, %arg2 : i32, i32
  }
  func.func @transform_1(%arg0: i32, %arg1: i32, %arg2: i32) -> (i32, i32) {
    %c0_i32 = arith.constant 0 : i32
    return %arg2, %arg1 : i32, i32
  }
  func.func @transform_2(%arg0: i32, %arg1: i32, %arg2: i32) -> (i32, i32) {
    %c0_i32 = arith.constant 0 : i32
    return %arg0, %arg1 : i32, i32
  }
}

</mosaic_0001>

<bundles_post_ra>
// kernel: tpu_custom_call.1
= control target key start
LH: loop header
LB: loop body
LE: loop exit
PB: predicated region body
PF: predicated region fallthrough
CT: control target
= control target key end

     0   :  { %7 = vsyncpa [#allocation3], 0  ;;  %v230_v1 = vmov 0.0   ;;  %vm231_vm0 = vmmov 0   ;;  %s289_s0 = inlined_call_operand.vmem [shape: bf16[8,128], index: 0, kind: input, shape index: {}]   ;;  %s290_s1 = inlined_call_operand.vmem [shape: bf16[128,32], index: 1, kind: input, shape index: {}]   ;;  %s291_s2 = inlined_call_operand.hbm [shape: f32[8,32], index: 2, kind: output, shape index: {}]  }
   0x1   :  { %v197_v0 = vld [vmem:[%s290_s1] sm:$0xff]   ;;  %172 = vmatprep.subr.bf16.mxu0 %v230_v1  ;;  %v198_v2 = vld [vmem:[%s290_s1 + $0x8] sm:$0xff]   ;;  %188 = vmatprep.mubr.msk.bf16.mxu0 %vm231_vm0, %v230_v1  ;;  %v199_v3 = vld [vmem:[%s290_s1 + $0x10] sm:$0xff]  }
   0x2   :  { %173 = vmatpush3.bf16.msra.mxu0 %v197_v0  ;;  %v200_v4 = vld [vmem:[%s290_s1 + $0x18] sm:$0xff]   ;;  %v201_v5 = vld [vmem:[%s290_s1 + $0x20] sm:$0xff]   ;;  %v202_v6 = vld [vmem:[%s290_s1 + $0x28] sm:$0xff]  }
   0x3   :  { %174 = vmatprep.subr.bf16.mxu0 %v230_v1  ;;  %v203_v7 = vld [vmem:[%s290_s1 + $0x30] sm:$0xff]   ;;  %v204_v8 = vld [vmem:[%s290_s1 + $0x38] sm:$0xff]   ;;  %v205_v9 = vld [vmem:[%s289_s0] sm:$0xff]  }
   0x6   :  { %175 = vmatpush3.bf16.msra.mxu0 %v198_v2 }
   0x7   :  { %176 = vmatprep.subr.bf16.mxu0 %v230_v1 }
   0xa   :  { %177 = vmatpush3.bf16.msra.mxu0 %v199_v3 }
   0xb   :  { %178 = vmatprep.subr.bf16.mxu0 %v230_v1 }
   0xe   :  { %179 = vmatpush3.bf16.msra.mxu0 %v200_v4 }
   0xf   :  { %180 = vmatprep.subr.bf16.mxu0 %v230_v1 }
  0x12   :  { %181 = vmatpush3.bf16.msra.mxu0 %v201_v5 }
  0x13   :  { %182 = vmatprep.subr.bf16.mxu0 %v230_v1 }
  0x16   :  { %183 = vmatpush3.bf16.msra.mxu0 %v202_v6 }
  0x17   :  { %184 = vmatprep.subr.bf16.mxu0 %v230_v1 }
  0x1a   :  { %185 = vmatpush3.bf16.msra.mxu0 %v203_v7 }
  0x1b   :  { %186 = vmatprep.subr.bf16.mxu0 %v230_v1 }
  0x1e   :  { %187 = vmatpush3.bf16.msra.mxu0 %v204_v8 }
  0x21   :  { %189 = vmatmul.mubr.bf16.vlgmr.msra.gmra.mrb[0].mxu0 %v205_v9 }
  0xf4   :  { %v127_v10 = vpop.f32.mrb[0].mxu0 }
  0xf5   :  { %v190_v11 = vpop.f32.mrb[1].mxu0  ;;  %136 = vst [vmem:[#allocation2] sm:$0xff] %v127_v10 }
  0xf6   :  { %v130_v12 = vpop.f32.mrb[2].mxu0 }
  0xf7   :  { %v191_v13 = vpop.f32.mrb[3].mxu0  ;;  %137 = vst [vmem:[#allocation2 + $0x8] sm:$0xff] %v130_v12 }
  0xf8   :  { %142 = vsyncadd [#allocation3], 128  ;;  %s232_s27 = smov [#allocation2]  }
  0xf9   :  { %s143_s28 = sshll.u32 %s232_s27, 4  ;;  %s144_s28 = int_to_ptr.vmem [resolvable:$true] %s143_s28 }
  0xfa   :  { %s206_s29 = scalar_lea.vmem %s144_s28, 128  ;;  %s210_s1 = scalar_lea.vmem %s144_s28, 256 }
  0xfb   :  { %p207_p0 = scmp.ne.s32.totalorder %s144_s28, %s206_s29  ;;  %p211_p1 = scmp.lt.s32.totalorder %s144_s28, %s144_s28 }
  0xfc   :  { %p212_p2 = scmp.lt.s32.totalorder %s210_s1, %s206_s29 }
  0xfe   :  { %p213_p3 = por %p212_p2, %p211_p1 }
 0x100   :  { %p214_p4 = pnand %p213_p3, %p207_p0 }
 0x102   :  { %217 = shalt.err (!%p214_p4)
}
 0x103   :  { %s218_s3 = scalar_lea.hbm %s291_s2, 128 }
 0x104   :  { %p219_p5 = scmp.ne.s32.totalorder %s291_s2, %s218_s3  ;;  %p222_p6 = scmp.lt.u32.totalorder %s218_s3, %s291_s2 }
 0x106   :  { %p224_p7 = pnand %p222_p6, %p219_p5 }
 0x108   :  { %227 = shalt.err (!%p224_p7)
}
 0x109   :  { %s233_s8 = smov 128   ;;  %s234_s9 = smov 8  }
 0x10a   :  { %149 = dma.vmem_to_hbm [thread:$0]  %s144_s28, 128, %s291_s2, [#allocation3], %s233_s8, %s233_s8, %s234_s9  }
 0x10b   :  { %228 = dma.done.wait [#allocation3], 256  }
 0x10c   :  { %229 = vsyncadd [#allocation3], 4294967040 }
 0x10d   :  { %153 = vsyncpa [#allocation3], 1 }

</bundles_post_ra>
